<compile_context>
chip_gen: v5e
topology: v5e:2x2
jax: 0.10.0
libtpu: 0.0.40
codegen_flags: <defaults>
</compile_context>

<pallas_src>
import jax
import jax.numpy as jnp
from jax.experimental import pallas as pl
from jax.experimental.pallas import tpu as pltpu


def attention_kernel(enc_ref, dec_ref, we_ref, be_ref, wd_ref, bd_ref, wf_ref,
                     awe_ref, alpha_ref):
    # enc_ref: (BB, P, E)   dec_ref: (BB, D)
    BB, P, E = enc_ref.shape
    A = we_ref.shape[1]

    enc = enc_ref[...]                                      # (BB, P, E)
    enc2d = enc.reshape(BB * P, E)                          # collapse batch*pixels

    # encoder_att: one large M-dim matmul for the whole batch block.
    att1 = jnp.dot(enc2d, we_ref[...],
                   preferred_element_type=jnp.float32) + be_ref[...]   # (BB*P, A)
    # decoder_att: all BB rows at once.
    att2 = jnp.dot(dec_ref[...], wd_ref[...],
                   preferred_element_type=jnp.float32) + bd_ref[...]   # (BB, A)

    h = jnp.maximum(att1.reshape(BB, P, A) + att2[:, None, :], 0.0)     # (BB, P, A)

    # full_att as VPU multiply + lane reduce (N=1 MXU matmul avoided).
    # full_att bias is dropped: it shifts every score equally and softmax is
    # shift-invariant, so alpha (the only consumer) is unchanged.
    score = jnp.sum(h * wf_ref[...][None, :, :], axis=-1)               # (BB, P)

    # softmax over the pixel axis (lane axis), numerically stable.
    m = jnp.max(score, axis=-1, keepdims=True)                          # (BB, 1)
    e = jnp.exp(score - m)                                              # (BB, P)
    denom = jnp.sum(e, axis=-1, keepdims=True)                          # (BB, 1)
    r = pl.reciprocal(denom, approx=True)                               # EUP slot
    r = r * (2.0 - denom * r)                                           # Newton step -> f32 accuracy
    alpha = e * r                                                       # (BB, P)

    # attention-weighted encoding: sum_p alpha[b, p] * enc[b, p, :]
    awe = jnp.sum(enc * alpha[:, :, None], axis=1)                      # (BB, E)

    awe_ref[...] = awe
    alpha_ref[...] = alpha


def attention_forward(encoder_out, decoder_hidden, params, *, batch_block=None):
    B, P, E = encoder_out.shape
    D = decoder_hidden.shape[1]
    A = params["we"].shape[1]

    # Block the batch axis; pad B up to a multiple of the block if needed.
    BB = batch_block if batch_block is not None else min(B, 8)
    Bp = pl.cdiv(B, BB) * BB
    if Bp != B:
        pad = Bp - B
        encoder_out = jnp.pad(encoder_out, ((0, pad), (0, 0), (0, 0)))
        decoder_hidden = jnp.pad(decoder_hidden, ((0, pad), (0, 0)))

    be = params["be"].reshape(1, A)
    bd = params["bd"].reshape(1, A)
    wf_row = params["wf"].reshape(1, A)   # (A, 1) -> row vector for VPU reduce

    # NOTE: for realistic Show-Attend-Tell dims (E~2048, A~512, P~196) set
    # pltpu.CompilerParams(vmem_limit_bytes=...) and size BB against VMEM
    # (64 MiB on v7x, 128 MiB on v5e/v6e).
    awe, alpha = pl.pallas_call(
        attention_kernel,
        out_shape=(
            jax.ShapeDtypeStruct((Bp, E), jnp.float32),
            jax.ShapeDtypeStruct((Bp, P), jnp.float32),
        ),
        grid=(Bp // BB,),
        in_specs=[
            pl.BlockSpec((BB, P, E), lambda b: (b, 0, 0)),   # encoder_out block
            pl.BlockSpec((BB, D), lambda b: (b, 0)),         # decoder_hidden block
            pl.BlockSpec((E, A), lambda b: (0, 0)),          # W_enc (resident)
            pl.BlockSpec((1, A), lambda b: (0, 0)),          # b_enc
            pl.BlockSpec((D, A), lambda b: (0, 0)),          # W_dec
            pl.BlockSpec((1, A), lambda b: (0, 0)),          # b_dec
            pl.BlockSpec((1, A), lambda b: (0, 0)),          # W_full as row
        ],
        out_specs=(
            pl.BlockSpec((BB, E), lambda b: (b, 0)),         # awe slab (lane-dense)
            pl.BlockSpec((BB, P), lambda b: (b, 0)),         # alpha slab (lane-dense)
        ),
        compiler_params=pltpu.CompilerParams(
            dimension_semantics=("parallel",)),
    )(encoder_out, decoder_hidden, params["we"], be, params["wd"], bd, wf_row)

    return awe[:B], alpha[:B]


def init_params(key, encoder_dim, decoder_dim, attention_dim):
    """Deterministic init mimicking nn.Linear's uniform(-1/sqrt(in), 1/sqrt(in))."""
    ks = jax.random.split(key, 6)

    def uni(k, shape, fan_in):
        bound = 1.0 / jnp.sqrt(fan_in)
        return jax.random.uniform(k, shape, jnp.float32, -bound, bound)

    return {
        "we": uni(ks[0], (encoder_dim, attention_dim), encoder_dim),
        "be": uni(ks[1], (attention_dim,), encoder_dim),
        "wd": uni(ks[2], (decoder_dim, attention_dim), decoder_dim),
        "bd": uni(ks[3], (attention_dim,), decoder_dim),
        "wf": uni(ks[4], (attention_dim, 1), attention_dim),
        "bf": uni(ks[5], (1,), attention_dim),   # kept for parity; no-op for outputs
    }


def attention_ref(encoder_out, decoder_hidden, p):
    att1 = encoder_out @ p["we"] + p["be"]                      # (B, P, A)
    att2 = decoder_hidden @ p["wd"] + p["bd"]                   # (B, A)
    h = jnp.maximum(att1 + att2[:, None, :], 0.0)
    att = (h @ p["wf"] + p["bf"])[..., 0]                       # (B, P)
    alpha = jax.nn.softmax(att, axis=1)
    awe = (encoder_out * alpha[:, :, None]).sum(axis=1)          # (B, E)
    return awe, alpha


if __name__ == "__main__":
    B, P = 2, 16                 # batch, num_pixels
    encoder_dim, decoder_dim, attention_dim = 32, 32, 32

    key = jax.random.PRNGKey(0)
    k_enc, k_dec, k_par = jax.random.split(key, 3)
    encoder_out = jax.random.normal(k_enc, (B, P, encoder_dim), jnp.float32)
    decoder_hidden = jax.random.normal(k_dec, (B, decoder_dim), jnp.float32)
    params = init_params(k_par, encoder_dim, decoder_dim, attention_dim)

    awe, alpha = attention_forward(encoder_out, decoder_hidden, params)
    jax.block_until_ready((awe, alpha))

    awe_ref, alpha_ref = attention_ref(encoder_out, decoder_hidden, params)
    assert awe.shape == (B, encoder_dim) and alpha.shape == (B, P)
    assert jnp.allclose(awe, awe_ref, rtol=1e-5, atol=1e-5)
    assert jnp.allclose(alpha, alpha_ref, rtol=1e-5, atol=1e-5)
    assert jnp.allclose(jnp.sum(alpha, axis=1), 1.0, rtol=1e-5, atol=1e-5)

    print("KERNEL_OK")
</pallas_src>

<mosaic_0001>
module attributes {stable_mosaic.version = 11 : i64} {
  func.func @attention_kernel(%arg0: i32, %arg1: memref<2x16x32xf32, #tpu.memory_space<vmem>>, %arg2: memref<2x32xf32, #tpu.memory_space<vmem>>, %arg3: memref<32x32xf32, #tpu.memory_space<vmem>>, %arg4: memref<1x32xf32, #tpu.memory_space<vmem>>, %arg5: memref<32x32xf32, #tpu.memory_space<vmem>>, %arg6: memref<1x32xf32, #tpu.memory_space<vmem>>, %arg7: memref<1x32xf32, #tpu.memory_space<vmem>>, %arg8: memref<2x32xf32, #tpu.memory_space<vmem>>, %arg9: memref<2x16xf32, #tpu.memory_space<vmem>>) attributes {dimension_semantics = [#tpu.dimension_semantics<parallel>], iteration_bounds = array<i64: 1>, scalar_prefetch = 0 : i64, scratch_operands = 0 : i64, tpu.core_type = #tpu.core_type<tc>, window_params = [{transform_indices = @transform_0, window_bounds = array<i64: 2, 16, 32>}, {transform_indices = @transform_1, window_bounds = array<i64: 2, 32>}, {pipeline_mode = #tpu.pipeline_mode<synchronous>, transform_indices = @transform_2, window_bounds = array<i64: 32, 32>}, {pipeline_mode = #tpu.pipeline_mode<synchronous>, transform_indices = @transform_3, window_bounds = array<i64: 1, 32>}, {pipeline_mode = #tpu.pipeline_mode<synchronous>, transform_indices = @transform_4, window_bounds = array<i64: 32, 32>}, {pipeline_mode = #tpu.pipeline_mode<synchronous>, transform_indices = @transform_5, window_bounds = array<i64: 1, 32>}, {pipeline_mode = #tpu.pipeline_mode<synchronous>, transform_indices = @transform_6, window_bounds = array<i64: 1, 32>}, {transform_indices = @transform_7, window_bounds = array<i64: 2, 32>}, {transform_indices = @transform_8, window_bounds = array<i64: 2, 16>}]} {
    %c0 = arith.constant 0 : index
    %c0_0 = arith.constant 0 : index
    %c0_1 = arith.constant 0 : index
    %0 = vector.load %arg1[%c0, %c0_0, %c0_1] : memref<2x16x32xf32, #tpu.memory_space<vmem>>, vector<2x16x32xf32>
    %1 = vector.shape_cast %0 : vector<2x16x32xf32> to vector<32x32xf32>
    %c0_2 = arith.constant 0 : index
    %c0_3 = arith.constant 0 : index
    %2 = vector.load %arg3[%c0_2, %c0_3] : memref<32x32xf32, #tpu.memory_space<vmem>>, vector<32x32xf32>
    %cst = arith.constant dense<0.000000e+00> : vector<32x32xf32>
    %3 = tpu.matmul %1, %2, %cst {dimension_numbers = #tpu.dot_dimension_numbers<[1], [0], [0], [1], [0, 0, 1, 1], [], []>} : vector<32x32xf32>, vector<32x32xf32>, vector<32x32xf32> -> vector<32x32xf32>
    %c0_4 = arith.constant 0 : index
    %c0_5 = arith.constant 0 : index
    %4 = vector.load %arg4[%c0_4, %c0_5] : memref<1x32xf32, #tpu.memory_space<vmem>>, vector<1x32xf32>
    %5 = vector.broadcast %4 : vector<1x32xf32> to vector<32x32xf32>
    %6 = arith.addf %3, %5 : vector<32x32xf32>
    %c0_6 = arith.constant 0 : index
    %c0_7 = arith.constant 0 : index
    %7 = vector.load %arg2[%c0_6, %c0_7] : memref<2x32xf32, #tpu.memory_space<vmem>>, vector<2x32xf32>
    %c0_8 = arith.constant 0 : index
    %c0_9 = arith.constant 0 : index
    %8 = vector.load %arg5[%c0_8, %c0_9] : memref<32x32xf32, #tpu.memory_space<vmem>>, vector<32x32xf32>
    %cst_10 = arith.constant dense<0.000000e+00> : vector<2x32xf32>
    %9 = tpu.matmul %7, %8, %cst_10 {dimension_numbers = #tpu.dot_dimension_numbers<[1], [0], [0], [1], [0, 0, 1, 1], [], []>} : vector<2x32xf32>, vector<32x32xf32>, vector<2x32xf32> -> vector<2x32xf32>
    %c0_11 = arith.constant 0 : index
    %c0_12 = arith.constant 0 : index
    %10 = vector.load %arg6[%c0_11, %c0_12] : memref<1x32xf32, #tpu.memory_space<vmem>>, vector<1x32xf32>
    %11 = vector.broadcast %10 : vector<1x32xf32> to vector<2x32xf32>
    %12 = arith.addf %9, %11 : vector<2x32xf32>
    %13 = vector.shape_cast %6 : vector<32x32xf32> to vector<2x16x32xf32>
    %14 = vector.shape_cast %12 : vector<2x32xf32> to vector<2x1x32xf32>
    %15 = vector.broadcast %14 : vector<2x1x32xf32> to vector<2x16x32xf32>
    %16 = arith.addf %13, %15 : vector<2x16x32xf32>
    %cst_13 = arith.constant 0.000000e+00 : f32
    %17 = vector.broadcast %cst_13 : f32 to vector<2x16x32xf32>
    %18 = arith.maximumf %16, %17 : vector<2x16x32xf32>
    %c0_14 = arith.constant 0 : index
    %c0_15 = arith.constant 0 : index
    %19 = vector.load %arg7[%c0_14, %c0_15] : memref<1x32xf32, #tpu.memory_space<vmem>>, vector<1x32xf32>
    %20 = vector.shape_cast %19 : vector<1x32xf32> to vector<1x1x32xf32>
    %21 = vector.broadcast %20 : vector<1x1x32xf32> to vector<2x16x32xf32>
    %22 = arith.mulf %18, %21 : vector<2x16x32xf32>
    %cst_16 = arith.constant dense<0.000000e+00> : vector<2x16xf32>
    %23 = vector.multi_reduction <add>, %22, %cst_16 [2] : vector<2x16x32xf32> to vector<2x16xf32>
    %cst_17 = arith.constant dense<0xFF800000> : vector<2xf32>
    %24 = vector.multi_reduction <maximumf>, %23, %cst_17 [1] : vector<2x16xf32> to vector<2xf32>
    %25 = vector.shape_cast %24 : vector<2xf32> to vector<2x1xf32>
    %26 = vector.broadcast %25 : vector<2x1xf32> to vector<2x16xf32>
    %27 = arith.subf %23, %26 : vector<2x16xf32>
    %28 = math.exp %27 : vector<2x16xf32>
    %cst_18 = arith.constant dense<0.000000e+00> : vector<2xf32>
    %29 = vector.multi_reduction <add>, %28, %cst_18 [1] : vector<2x16xf32> to vector<2xf32>
    %30 = vector.shape_cast %29 : vector<2xf32> to vector<2x1xf32>
    %31 = tpu.reciprocal %30 {approx = true} : vector<2x1xf32> -> vector<2x1xf32>
    %32 = arith.mulf %30, %31 : vector<2x1xf32>
    %cst_19 = arith.constant 2.000000e+00 : f32
    %33 = vector.broadcast %cst_19 : f32 to vector<2x1xf32>
    %34 = arith.subf %33, %32 : vector<2x1xf32>
    %35 = arith.mulf %31, %34 : vector<2x1xf32>
    %36 = vector.broadcast %35 : vector<2x1xf32> to vector<2x16xf32>
    %37 = arith.mulf %28, %36 : vector<2x16xf32>
    %38 = vector.shape_cast %37 : vector<2x16xf32> to vector<2x16x1xf32>
    %39 = vector.broadcast %38 : vector<2x16x1xf32> to vector<2x16x32xf32>
    %40 = arith.mulf %0, %39 : vector<2x16x32xf32>
    %cst_20 = arith.constant dense<0.000000e+00> : vector<2x32xf32>
    %41 = vector.multi_reduction <add>, %40, %cst_20 [1] : vector<2x16x32xf32> to vector<2x32xf32>
    %c0_21 = arith.constant 0 : index
    %c0_22 = arith.constant 0 : index
    %42 = vector.load %arg8[%c0_21, %c0_22] : memref<2x32xf32, #tpu.memory_space<vmem>>, vector<2x32xf32>
    tpu.vector_store %arg8[%c0_21, %c0_22], %41 {strides = array<i32>} : memref<2x32xf32, #tpu.memory_space<vmem>>, vector<2x32xf32>,
    %c0_23 = arith.constant 0 : index
    %c0_24 = arith.constant 0 : index
    %43 = vector.load %arg9[%c0_23, %c0_24] : memref<2x16xf32, #tpu.memory_space<vmem>>, vector<2x16xf32>
    tpu.vector_store %arg9[%c0_23, %c0_24], %37 {strides = array<i32>} : memref<2x16xf32, #tpu.memory_space<vmem>>, vector<2x16xf32>,
    return
  }
  func.func @transform_0(%arg0: i32) -> (i32, i32, i32) {
    %c0_i32 = arith.constant 0 : i32
    %c0_i32_0 = arith.constant 0 : i32
    %c0_i32_1 = arith.constant 0 : i32
    return %arg0, %c0_i32, %c0_i32_0 : i32, i32, i32
  }
  func.func @transform_1(%arg0: i32) -> (i32, i32) {
    %c0_i32 = arith.constant 0 : i32
    %c0_i32_0 = arith.constant 0 : i32
    return %arg0, %c0_i32 : i32, i32
  }
  func.func @transform_2(%arg0: i32) -> (i32, i32) {
    %c0_i32 = arith.constant 0 : i32
    %c0_i32_0 = arith.constant 0 : i32
    %c0_i32_1 = arith.constant 0 : i32
    return %c0_i32, %c0_i32_0 : i32, i32
  }
  func.func @transform_3(%arg0: i32) -> (i32, i32) {
    %c0_i32 = arith.constant 0 : i32
    %c0_i32_0 = arith.constant 0 : i32
    %c0_i32_1 = arith.constant 0 : i32
    return %c0_i32, %c0_i32_0 : i32, i32
  }
  func.func @transform_4(%arg0: i32) -> (i32, i32) {
    %c0_i32 = arith.constant 0 : i32
    %c0_i32_0 = arith.constant 0 : i32
    %c0_i32_1 = arith.constant 0 : i32
    return %c0_i32, %c0_i32_0 : i32, i32
  }
  func.func @transform_5(%arg0: i32) -> (i32, i32) {
    %c0_i32 = arith.constant 0 : i32
    %c0_i32_0 = arith.constant 0 : i32
    %c0_i32_1 = arith.constant 0 : i32
    return %c0_i32, %c0_i32_0 : i32, i32
  }
  func.func @transform_6(%arg0: i32) -> (i32, i32) {
    %c0_i32 = arith.constant 0 : i32
    %c0_i32_0 = arith.constant 0 : i32
    %c0_i32_1 = arith.constant 0 : i32
    return %c0_i32, %c0_i32_0 : i32, i32
  }
  func.func @transform_7(%arg0: i32) -> (i32, i32) {
    %c0_i32 = arith.constant 0 : i32
    %c0_i32_0 = arith.constant 0 : i32
    return %arg0, %c0_i32 : i32, i32
  }
  func.func @transform_8(%arg0: i32) -> (i32, i32) {
    %c0_i32 = arith.constant 0 : i32
    %c0_i32_0 = arith.constant 0 : i32
    return %arg0, %c0_i32 : i32, i32
  }
}

</mosaic_0001>

<bundles_post_ra>
// kernel: tpu_custom_call.1
= control target key start
LH: loop header
LB: loop body
LE: loop exit
PB: predicated region body
PF: predicated region fallthrough
CT: control target
= control target key end

     0   :  { %14 = vsyncpa [#allocation3], 0  ;;  %s713_s0 = inlined_call_operand.hbm [shape: f32[2,16,32], index: 0, kind: input, shape index: {}]   ;;  %s714_s1 = inlined_call_operand.hbm [shape: f32[2,32], index: 1, kind: input, shape index: {}]   ;;  %s715_s2 = inlined_call_operand.hbm [shape: f32[32,32], index: 2, kind: input, shape index: {}]   ;;  %s716_s3 = inlined_call_operand.vmem [shape: f32[1,32], index: 3, kind: input, shape index: {}]   ;;  %s717_s4 = inlined_call_operand.hbm [shape: f32[32,32], index: 4, kind: input, shape index: {}]   ;;  %s718_s5 = inlined_call_operand.vmem [shape: f32[1,32], index: 5, kind: input, shape index: {}]   ;;  %s719_s6 = inlined_call_operand.vmem [shape: f32[1,32], index: 6, kind: input, shape index: {}]   ;;  %s720_s7 = inlined_call_operand.hbm [shape: f32[2,32], index: 7, kind: output, shape index: {0}]   ;;  %s721_s8 = inlined_call_operand.hbm [shape: f32[2,16], index: 8, kind: output, shape index: {1}]  }
   0x1   :  { %15 = vsyncpa [#allocation6], 0 }
   0x2   :  { %16 = vsyncpa [#allocation9], 0 }
   0x3   :  { %17 = vsyncpa [#allocation4], 0  ;;  %s37_s29 = sshll.u32 %s714_s1, 4  ;;  %s38_s29 = int_to_ptr.hbm [resolvable:$true] %s37_s29 }
   0x4   :  { %18 = vsyncpa [#allocation12], 0  ;;  %s573_s30 = smov [#allocation5]   ;;  %s23_s12 = sshll.u32 %s713_s0, 4  ;;  %s24_s12 = int_to_ptr.hbm [resolvable:$true] %s23_s12 }
   0x5   :  { %s39_s9 = sshll.u32 %s573_s30, 4  ;;  %s574_s13 = smov [#allocation2]   ;;  %s40_s9 = int_to_ptr.vmem [resolvable:$true] %s39_s9 }
   0x6   :  { %42 = dma.hbm_to_vmem [thread:$0]  %s38_s29, 32, %s40_s9, [#allocation6]  }
   0x7   :  { %s25_s14 = sshll.u32 %s574_s13, 4  ;;  %s575_s15 = smov 128   ;;  %s26_s14 = int_to_ptr.vmem [resolvable:$true] %s25_s14 }
   0x8   :  { %s576_s16 = smov 8   ;;  %s47_s1 = sshll.u32 %s715_s2, 4  ;;  %s48_s1 = int_to_ptr.hbm [resolvable:$true] %s47_s1 }
   0x9   :  { %31 = dma.hbm_to_vmem [thread:$0]  %s24_s12, 512, %s26_s14, [#allocation3], %s575_s15, %s575_s15, %s576_s16  }
   0xa   :  { %s577_s19 = smov [#allocation7]   ;;  %s62_s0 = sshll.u32 %s717_s4, 4  ;;  %s63_s0 = int_to_ptr.hbm [resolvable:$true] %s62_s0 }
   0xb   :  { %s49_s20 = sshll.u32 %s577_s19, 4  ;;  %s578_s23 = smov [#allocation8]   ;;  %s50_s20 = int_to_ptr.vmem [resolvable:$true] %s49_s20 }
   0xc   :  { %55 = dma.hbm_to_vmem [thread:$0]  %s48_s1, 512, %s50_s20, [#allocation6], %s575_s15, %s575_s15, %s576_s16  }
   0xd   :  { %s64_s24 = sshll.u32 %s578_s23, 4  ;;  %s65_s24 = int_to_ptr.vmem [resolvable:$true] %s64_s24 }
   0xe   :  { %70 = dma.hbm_to_vmem [thread:$0]  %s63_s0, 512, %s65_s24, [#allocation9], %s575_s15, %s575_s15, %s576_s16  }
   0xf   :  { %563 = dma.done.wait [#allocation3], 512  }
  0x10   :  { %564 = vsyncadd [#allocation3], 4294966784 }
  0x11   :  { %565 = dma.done.wait [#allocation6], 544  }
  0x12   :  { %566 = vsyncadd [#allocation6], 4294966752 }
  0x13   :  { %567 = dma.done.wait [#allocation9], 512  }
  0x14   :  { %568 = vsyncadd [#allocation9], 4294966784  ;;  %v98_v0 = vld [vmem:[#allocation7 + $0x18] sm:$0xff]  ;;  %v97_v2 = vld [vmem:[#allocation7 + $0x10] sm:$0xff]  ;;  %vm103_vm0 = vcmask 261120   ;;  %v215_v46 = vlaneseq  ;;  %vm220_vm1 = vcmask 130112  }
  0x15   :  { %v149_v1 = vld [vmem:[#allocation8 + $0x18] sm:$0xff]  ;;  %386 = vmatpush.msra.mxu2 %v98_v0  ;;  %387 = vmatpush.msra.mxu3 %v98_v0  ;;  %v148_v3 = vld [vmem:[#allocation8 + $0x10] sm:$0xff]  ;;  %v96_v4 = vld [vmem:[#allocation7 + $0x8] sm:$0xff]  ;;  %vm225_vm2 = vcmask 1041409   ;;  %vm228_vm3 = vcmask 123904   ;;  %v579_v60 = vmov 0  }
  0x16   :  { %169 = vmatpush.msra.mxu1 %v149_v1  ;;  %128 = vmatpush.msra.mxu0 %v98_v0  ;;  %v147_v5 = vld [vmem:[#allocation8 + $0x8] sm:$0xff]  ;;  %v95_v6 = vld [vmem:[#allocation7] sm:$0xff]  ;;  %v145_v10 = vld [vmem:[#allocation5] sm:$0x3]  ;;  %v669_v48 = vand.u32 127, %v215_v46  ;;  %s364_s30 = sshll.u32 %s721_s8, 4  ;;  %s365_s30 = int_to_ptr.hbm [resolvable:$true] %s364_s30 }
  0x17   :  { %388 = vmatpush.msra.mxu2 %v97_v2  ;;  %389 = vmatpush.msra.mxu3 %v97_v2  ;;  %v146_v7 = vld [vmem:[#allocation8] sm:$0xff]  ;;  %v641_v9 = vld [vmem:[#allocation2 + $0x10] sm:$0xff]  ;;  %v652_v12 = vld [vmem:[#allocation2 + $0x18] sm:$0xff]  ;;  %s581_s8 = smov [#allocation10]   ;;  %s353_s12 = sshll.u32 %s720_s7, 4  ;;  %vm335_vm4 = vcmask 254976   ;;  %s354_s12 = int_to_ptr.hbm [resolvable:$true] %s353_s12 }
  0x18   :  { %170 = vmatpush.msra.mxu1 %v148_v3  ;;  %129 = vmatpush.msra.mxu0 %v97_v2  ;;  %v639_v8 = vld [vmem:[#allocation2 + $0x8] sm:$0xff]  ;;  %v645_v11 = vld [vmem:[#allocation2] sm:$0xff]  ;;  %v672_v49 = vadd.s32 4294967288, %v669_v48  ;;  %s351_s9 = sshll.u32 %s581_s8, 4  ;;  %s352_s9 = int_to_ptr.vmem [resolvable:$true] %s351_s9 }
  0x19   :  { %390 = vmatpush.msra.mxu2 %v96_v4  ;;  %391 = vmatpush.msra.mxu3 %v96_v4  ;;  %v406_v13 = vld [vmem:[%s718_s5] ss:$0 sm:$0xff] }
  0x1a   :  { %171 = vmatpush.msra.mxu1 %v147_v5  ;;  %130 = vmatpush.msra.mxu0 %v96_v4  ;;  %v407_v14 = vld [vmem:[%s716_s3] ss:$0 sm:$0xff]  ;;  %s580_s3 = smov [#allocation11]  }
  0x1b   :  { %392 = vmatpush.msra.mxu2 %v95_v6  ;;  %393 = vmatpush.msra.mxu3 %v95_v6  ;;  %v408_v24 = vld [vmem:[%s719_s6] ss:$0 sm:$0xff]  ;;  %s362_s5 = sshll.u32 %s580_s3, 4  ;;  %s363_s5 = int_to_ptr.vmem [resolvable:$true] %s362_s5 }
  0x1c   :  { %172 = vmatpush.msra.mxu1 %v146_v7  ;;  %382 = vmatmul.msk.f32.vlgmr.msra.gmra.mxu2 %vm103_vm0, %v639_v8 }
  0x1d   :  { %383 = vmatmul.msk.f32.vlgmr.msra.gmra.mxu3 %vm103_vm0, %v641_v9  ;;  %385 = vmatmul.msk.f32.vlgmr.msra.gmra.mxu1 %vm103_vm0, %v145_v10 }
  0x1e   :  { %131 = vmatpush.msra.mxu0 %v95_v6  ;;  %405 = vset.pattern.permute.xlu1 %v579_v60 }
  0x1f   :  { %381 = vmatmul.msk.f32.vlgmr.msra.gmra.mxu0 %vm103_vm0, %v645_v11  ;;  %404 = vset.pattern.permute.xlu0 %v579_v60 }
  0x20   :  { %403 = vset.pattern.permute.xlu2 %v579_v60 }
  0x25   :  { %384 = vmatmul.msk.f32.gmra.mxu3 %vm103_vm0, %v652_v12 }
  0x9a   :  { %v174_v15 = vpop.f32.mrf.mxu1 }
  0x9b   :  { %v175_v16 = vadd.f32 %v406_v13, %v174_v15 }
  0x9c   :  { %v133_v17 = vpop.f32.mrf.mxu0 }
  0x9d   :  { %v178_v18 = vrot.slane %v175_v16, 1  ;;  %v179_v19 = vperm.slane %v175_v16, 0  ;;  %v134_v20 = vadd.f32 %v407_v14, %v133_v17 }
  0x9f   :  { %v180_v21 = vperm.slane %v178_v18, 0  ;;  %v183_v22 = vadd.f32 %v179_v19, %v134_v20  ;;  %v136_v23 = vpop.f32.mrf.mxu2 }
  0xa0   :  { %v137_v25 = vadd.f32 %v407_v14, %v136_v23  ;;  %v139_v26 = vpop.f32.mrf.mxu3 }
  0xa1   :  { %v187_v27 = vmax.f32 %v183_v22, 0.0  ;;  %v140_v28 = vadd.f32 %v407_v14, %v139_v26 }
  0xa2   :  { %v184_v29 = vadd.f32 %v179_v19, %v137_v25 }
  0xa3   :  { %v185_v30 = vadd.f32 %v180_v21, %v140_v28  ;;  %v195_v31 = vmul.f32 %v408_v24, %v187_v27 }
  0xa4   :  { %v188_v32 = vmax.f32 %v184_v29, 0.0 }
  0xa5   :  { %v189_v33 = vmax.f32 %v185_v30, 0.0  ;;  %v199_v34 = vsel %vm103_vm0, %v195_v31, 0.0 }
  0xa6   :  { %200 = vadd.xlane.f32.xlu0 %v199_v34  ;;  %v196_v39 = vmul.f32 %v408_v24, %v188_v32 }
  0xa7   :  { %v197_v35 = vmul.f32 %v408_v24, %v189_v33 }
  0xa8   :  { %v142_v36 = vpop.f32.mrf.mxu3  ;;  %v202_v42 = vsel %vm103_vm0, %v196_v39, 0.0 }
  0xa9   :  { %v143_v37 = vadd.f32 %v407_v14, %v142_v36  ;;  %v205_v38 = vsel %vm103_vm0, %v197_v35, 0.0 }
  0xaa   :  { %206 = vadd.xlane.f32.xlu1 %v205_v38 }
  0xab   :  { %v186_v40 = vadd.f32 %v180_v21, %v143_v37 }
  0xad   :  { %v190_v41 = vmax.f32 %v186_v40, 0.0 }
  0xae   :  { %203 = vadd.xlane.f32.xlu0 %v202_v42 }
  0xaf   :  { %v198_v43 = vmul.f32 %v408_v24, %v190_v41 }
  0xb1   :  { %v208_v44 = vsel %vm103_vm0, %v198_v43, 0.0 }
  0xb2   :  { %209 = vadd.xlane.f32.xlu1 %v208_v44 }
 0x119   :  { %v201_v45 = vpop.xlane.xlu0 %200 }
 0x11a   :  { %v217_v53 = vperm.slane %v201_v45, %v669_v48 }
 0x11d   :  { %v207_v47 = vpop.xlane.xlu1 %206 }
 0x11e   :  { %v222_v54 = vperm.slane %v207_v47, %v669_v48 }
 0x121   :  { %v204_v50 = vpop.xlane.xlu0 %203 }
 0x122   :  { %v219_v51 = vperm.slane %v204_v50, %v672_v49 }
 0x124   :  { %v221_v56 = vsel %vm220_vm1, %v219_v51, %v217_v53 }
 0x125   :  { %v210_v52 = vpop.xlane.xlu1 %209 }
 0x126   :  { %v223_v55 = vperm.slane %v210_v52, %v672_v49 }
 0x128   :  { %v224_v57 = vsel %vm220_vm1, %v223_v55, %v222_v54 }
 0x129   :  { %v226_v58 = vsel %vm225_vm2, %v224_v57, %v221_v56 }
 0x12a   :  { %v229_v59 = vsel %vm228_vm3, %v226_v58, -inf }
 0x12b   :  { %230 = vmax.xlane.f32.xlu2 %v229_v59 }
 0x19e   :  { %v231_v61 = vpop.xlane.xlu2 %230 }
 0x19f   :  { %v233_v62 = vperm.slane %v231_v61, 0  ;;  %v234_v63 = vperm.slane %v231_v61, 1 }
 0x1a1   :  { %v237_v0 = vsub.f32 %v201_v45, %v233_v62  ;;  %v238_v1 = vsub.f32 %v204_v50, %v233_v62  ;;  %v239_v2 = vsub.f32 %v207_v47, %v234_v63  ;;  %v240_v6 = vsub.f32 %v210_v52, %v234_v63 }
 0x1a3   :  { %v241_v3 = vmul.f32 1.442695, %v237_v0  ;;  %v243_v4 = vmul.f32 1.442695, %v238_v1  ;;  %v245_v5 = vmul.f32 1.442695, %v239_v2 }
 0x1a4   :  { %v247_v7 = vmul.f32 1.442695, %v240_v6 }
 0x1a5   :  { %409 = vpow2.f32 %v241_v3 }
 0x1a6   :  { %411 = vpow2.f32 %v243_v4 }
 0x1a7   :  { %413 = vpow2.f32 %v245_v5 }
 0x1a8   :  { %415 = vpow2.f32 %v247_v7 }
 0x1ab   :  { %v410_v10 = vpop.eup %409 }
 0x1ac   :  { %v412_v13 = vpop.eup %411  ;;  %254 = vperm.xlu2 %403, %v410_v10  }
 0x1ad   :  { %v414_v14 = vpop.eup %413  ;;  %257 = vperm.xlu0 %404, %v412_v13  }
 0x1ae   :  { %260 = vperm.xlu1 %405, %v414_v14   ;;  %v416_v15 = vpop.eup %415 }
 0x1b4   :  { %263 = vperm.xlu2 %403, %v416_v15  }
 0x206   :  { %v255_v16 = vpop.permute.xlu2 %254 }
 0x207   :  { %v265_v19 = vperm.slane %v255_v16, %v669_v48 }
 0x20e   :  { %v264_v17 = vpop.permute.xlu2 %263 }
 0x20f   :  { %v269_v22 = vperm.slane %v264_v17, %v672_v49 }
 0x21f   :  { %v258_v18 = vpop.permute.xlu0 %257 }
 0x220   :  { %v261_v20 = vpop.permute.xlu1 %260  ;;  %v266_v21 = vperm.slane %v258_v18, %v672_v49 }
 0x221   :  { %v268_v23 = vperm.slane %v261_v20, %v669_v48 }
 0x222   :  { %v267_v24 = vsel %vm220_vm1, %v266_v21, %v265_v19 }
 0x223   :  { %v270_v25 = vsel %vm220_vm1, %v269_v22, %v268_v23 }
 0x224   :  { %v271_v26 = vsel %vm225_vm2, %v270_v25, %v267_v24 }
 0x225   :  { %v273_v27 = vsel %vm228_vm3, %v271_v26, 0.0 }
 0x226   :  { %274 = vadd.xlane.f32.xlu2 %v273_v27 }
 0x299   :  { %v275_v28 = vpop.xlane.xlu2 %274 }
 0x29a   :  { %417 = vrcp.f32 %v275_v28 }
 0x2a0   :  { %v418_v29 = vpop.eup %417 }
 0x2a1   :  { %v277_v30 = vmul.f32 %v418_v29, %v275_v28 }
 0x2a3   :  { %v278_v31 = vsub.f32 2.0, %v277_v30 }
 0x2a5   :  { %v279_v32 = vmul.f32 %v418_v29, %v278_v31 }
 0x2a7   :  { %v281_v33 = vperm.slane %v279_v32, 0  ;;  %v282_v34 = vperm.slane %v279_v32, 1 }
 0x2a9   :  { %v287_v35 = vmul.f32 %v414_v14, %v282_v34  ;;  %v285_v36 = vmul.f32 %v410_v10, %v281_v33  ;;  %v286_v37 = vmul.f32 %v412_v13, %v281_v33  ;;  %v288_v38 = vmul.f32 %v416_v15, %v282_v34 }
 0x2ab   :  { %301 = vperm.xlu0 %404, %v287_v35   ;;  %291 = vperm.xlu1 %405, %v285_v36  }
 0x2b3   :  { %296 = vperm.xlu1 %405, %v286_v37  }
 0x2bb   :  { %306 = vperm.xlu1 %405, %v288_v38  }
 0x31d   :  { %v292_v39 = vpop.permute.xlu1 %291  ;;  %v302_v45 = vpop.permute.xlu0 %301 }
 0x31e   :  { %v309_v40 = vmul.f32 %v292_v39, %v645_v11  ;;  %v311_v50 = vmul.f32 %v302_v45, %v641_v9  ;;  %v337_v11 = vperm.slane %v292_v39, %v669_v48 }
 0x320   :  { %v313_v43 = vsel %vm103_vm0, %v309_v40, 0.0  ;;  %v322_v9 = vsel %vm103_vm0, %v311_v50, 0.0 }
 0x325   :  { %v297_v41 = vpop.permute.xlu1 %296 }
 0x326   :  { %v310_v42 = vmul.f32 %v297_v41, %v639_v8  ;;  %v338_v51 = vperm.slane %v297_v41, %v672_v49  ;;  %v340_v8 = vperm.slane %v302_v45, %v669_v48 }
 0x328   :  { %v314_v44 = vsel %vm103_vm0, %v310_v42, 0.0  ;;  %v339_v56 = vsel %vm220_vm1, %v338_v51, %v337_v11 }
 0x329   :  { %v315_v46 = vadd.f32 %v314_v44, %v313_v43 }
 0x32b   :  { %v316_v47 = vrot.slane %v315_v46, 4 }
 0x32d   :  { %v317_v52 = vadd.f32 %v316_v47, %v315_v46  ;;  %v307_v53 = vpop.permute.xlu1 %306 }
 0x32e   :  { %v312_v54 = vmul.f32 %v307_v53, %v652_v12  ;;  %v341_v55 = vperm.slane %v307_v53, %v672_v49 }
 0x32f   :  { %v318_v59 = vrot.slane %v317_v52, 2 }
 0x330   :  { %v323_v57 = vsel %vm103_vm0, %v312_v54, 0.0  ;;  %v342_v58 = vsel %vm220_vm1, %v341_v55, %v340_v8 }
 0x331   :  { %v324_v60 = vadd.f32 %v323_v57, %v322_v9  ;;  %v343_v61 = vsel %vm225_vm2, %v342_v58, %v339_v56  ;;  %v319_v12 = vadd.f32 %v318_v59, %v317_v52 }
 0x332   :  { %345 = vst.msk [vmem:[#allocation11] sm:$0x3] %vm228_vm3, %v343_v61 }
 0x333   :  { %v325_v48 = vrot.slane %v324_v60, 4  ;;  %367 = dma.vmem_to_hbm [thread:$0]  %s363_s5, 32, %s365_s30, [#allocation12]   ;;  %v320_v63 = vrot.slane %v319_v12, 1 }
 0x335   :  { %v326_v49 = vadd.f32 %v325_v48, %v324_v60  ;;  %v321_v3 = vadd.f32 %v320_v63, %v319_v12 }
 0x337   :  { %v327_v62 = vrot.slane %v326_v49, 2 }
 0x339   :  { %v328_v0 = vadd.f32 %v327_v62, %v326_v49 }
 0x33b   :  { %v329_v1 = vrot.slane %v328_v0, 1 }
 0x33d   :  { %v330_v2 = vadd.f32 %v329_v1, %v328_v0 }
 0x33f   :  { %v333_v4 = vsel %vm225_vm2, %v330_v2, %v321_v3 }
 0x340   :  { %336 = vst.msk [vmem:[#allocation10] sm:$0x3] %vm335_vm4, %v333_v4 }
 0x341   :  { %356 = dma.vmem_to_hbm [thread:$0]  %s352_s9, 32, %s354_s12, [#allocation4]  }
 0x342   :  { %569 = dma.done.wait [#allocation4], 32  }
 0x343   :  { %570 = vsyncadd [#allocation4], 4294967264 }
 0x344   :  { %571 = dma.done.wait [#allocation12], 32  }
 0x345   :  { %572 = vsyncadd [#allocation12], 4294967264 }
 0x346   :  { %376 = vsyncpa [#allocation3], 1 }
 0x347   :  { %377 = vsyncpa [#allocation6], 1 }
 0x348   :  { %378 = vsyncpa [#allocation9], 1 }
 0x349   :  { %379 = vsyncpa [#allocation4], 1 }
 0x34a   :  { %380 = vsyncpa [#allocation12], 1 }

</bundles_post_ra>
